<compile_context>
chip_gen: v5e
topology: v5e:2x2
jax: 0.10.0
libtpu: 0.0.40
codegen_flags: <defaults>
</compile_context>

<pallas_src>
import functools
import math

import jax
import jax.numpy as jnp
from jax import lax
from jax.experimental import pallas as pl
from jax.experimental.pallas import tpu as pltpu

_LANE = 128
_SUBLANE = 8
_DEFAULT_BLOCK_BYTES = 4 * 1024 * 1024   # ~4 MiB input block (x2 double-buffered)
_DEFAULT_MAX_COLS = 16384                # cap on lane extent of a block


def _round_up(a, b):
    return (a + b - 1) // b * b


def _cdiv(a, b):
    return -(-a // b)


def _nce_tile_kernel(x_ref, o_ref, *, c, bsz, m1, tr, tc, n_ct,
                     mask_rows, mask_cols):
    """Per-(row-tile, col-tile) partial of:
         sum_rows log(x[:, 0])  -  sum_all log(x + c)

    x_ref : (tr, tc) tile of the (bsz, m+1) score matrix (native dtype).
    o_ref : (8, 128) f32 block, filled with this tile's partial sum
            (lane-dense full-block store -> unmasked vst).
    """
    i = pl.program_id(0)          # row tile
    j = pl.program_id(1)          # col tile

    x = x_ref[...].astype(jnp.float32)            # upcast in-register
    log_den = jnp.log(x + jnp.float32(c))         # single log per element (EUP)

    # Mask ragged-tile garbage (Pallas OOB block content is unspecified).
    valid = None
    if mask_rows:
        row = i * tr + lax.broadcasted_iota(jnp.int32, x.shape, 0)
        valid = row < bsz
    if mask_cols:
        col = j * tc + lax.broadcasted_iota(jnp.int32, x.shape, 1)
        cmask = col < m1
        valid = cmask if valid is None else (valid & cmask)
    if valid is not None:
        log_den = jnp.where(valid, log_den, jnp.float32(0.0))

    part = -jnp.sum(log_den)

    # Positive-column contribution sum(log(x[:, 0])): column 0 of the score
    # matrix lives in col-tile 0 only.  Cost is ~1/tc of the main work.
    pos = x[:, 0:1]
    log_pos = jnp.log(pos)
    if mask_rows:
        rowp = i * tr + lax.broadcasted_iota(jnp.int32, log_pos.shape, 0)
        log_pos = jnp.where(rowp < bsz, log_pos, jnp.float32(0.0))
    pos_term = jnp.sum(log_pos)
    if n_ct == 1:
        part = part + pos_term
    else:
        part = part + jnp.where(j == 0, pos_term, jnp.float32(0.0))

    # Lane-dense full-block store of the scalar partial.
    o_ref[...] = jnp.full(o_ref.shape, part, dtype=o_ref.dtype)


def nce_criterion_pallas(x, n_data, *,
                         target_block_bytes=_DEFAULT_BLOCK_BYTES,
                         max_cols=_DEFAULT_MAX_COLS):
    """x: (bsz, m+1, 1) or (bsz, m+1) -> loss of shape (1,), float32."""
    if x.ndim == 3:
        assert x.shape[-1] == 1
        x = jnp.squeeze(x, -1)                    # free (metadata only)
    assert x.ndim == 2
    bsz, m1 = x.shape
    m = m1 - 1
    pn = 1.0 / float(n_data)
    eps = 1e-5
    c = m * pn + eps

    # Stream native low-precision dtypes directly; cast anything else to f32.
    if x.dtype not in (jnp.float32, jnp.bfloat16, jnp.float16):
        x = x.astype(jnp.float32)
    itemsize = jnp.dtype(x.dtype).itemsize

    # ---- Column (lane) tiling ----
    max_cols = max(_LANE, _round_up(int(max_cols), _LANE))
    if m1 <= max_cols:
        tc = m1                                   # block == full dim -> legal
        n_ct = 1
        mask_cols = False
    else:
        tc = max_cols                             # multiple of 128
        n_ct = _cdiv(m1, tc)
        mask_cols = (n_ct * tc != m1)

    # ---- Row (sublane) tiling ----
    lanes = _round_up(tc, _LANE)                  # in-VMEM padded lane extent
    bytes_per_row = lanes * itemsize
    tr_cap = max(_SUBLANE,
                 (int(target_block_bytes) // bytes_per_row) // _SUBLANE * _SUBLANE)
    if bsz <= tr_cap:
        tr = bsz                                  # block == full dim -> legal
        n_rt = 1
        mask_rows = False
    else:
        tr = tr_cap                               # multiple of 8
        n_rt = _cdiv(bsz, tr)
        mask_rows = (n_rt * tr != bsz)

    kernel = functools.partial(
        _nce_tile_kernel,
        c=float(c), bsz=int(bsz), m1=int(m1),
        tr=int(tr), tc=int(tc), n_ct=int(n_ct),
        mask_rows=bool(mask_rows), mask_cols=bool(mask_cols),
    )

    n_tiles = n_rt * n_ct
    partial_blocks = pl.pallas_call(
        kernel,
        out_shape=jax.ShapeDtypeStruct((n_tiles * _SUBLANE, _LANE), jnp.float32),
        grid=(n_rt, n_ct),
        in_specs=[
            pl.BlockSpec((tr, tc), lambda i, j: (i, j)),
        ],
        out_specs=pl.BlockSpec((_SUBLANE, _LANE),
                               lambda i, j, _n=n_ct: (i * _n + j, 0)),
        compiler_params=pltpu.CompilerParams(
            dimension_semantics=("parallel", "parallel"),  # megacore-friendly
            vmem_limit_bytes=32 * 1024 * 1024,
        ),
    )(x)

    partials = partial_blocks[::_SUBLANE, 0]                 # (n_tiles,)
    # Constant numerator term: N_neg * log(m * Pn), exact at trace time.
    const = float(bsz * m) * math.log(m * pn) if m > 0 else 0.0
    total = jnp.sum(partials) + jnp.float32(const)
    loss = -(total / jnp.float32(bsz))
    return loss.reshape((1,))


def nce_criterion_ref(x, n_data):
    """Pure-JAX reference mirroring the PyTorch module."""
    bsz = x.shape[0]
    m = x.shape[1] - 1
    eps = 1e-5
    pn = 1.0 / float(n_data)
    p_pos = x[:, 0]                                   # (bsz, 1)
    log_d1 = jnp.log(p_pos / (p_pos + m * pn + eps))
    p_neg = x[:, 1:]                                  # (bsz, m, 1)
    log_d0 = jnp.log((m * pn) / (p_neg + m * pn + eps))
    loss = -(jnp.sum(log_d1, axis=0) + jnp.sum(log_d0.reshape(-1, 1), axis=0)) / bsz
    return loss


if __name__ == "__main__":
    key = jax.random.PRNGKey(0)

    # Primary test: small shape matching the module's expected input layout.
    bsz, m_plus_1, n_data = 8, 16, 1000
    # NCE scores are positive (softmax-like outputs); use uniform (1e-3, 1].
    x = jax.random.uniform(key, (bsz, m_plus_1, 1), jnp.float32,
                           minval=1e-3, maxval=1.0)
    loss = jax.block_until_ready(nce_criterion_pallas(x, n_data))
    ref = nce_criterion_ref(x, n_data)
    assert loss.shape == (1,)
    assert jnp.allclose(loss, ref, rtol=1e-5, atol=1e-5), (loss, ref)

    # Secondary test: force tiny blocks so ragged row/col tiles and in-kernel
    # masking paths are exercised (still small & fast).
    x2 = jax.random.uniform(jax.random.PRNGKey(0), (37, 300, 1), jnp.float32,
                            minval=1e-3, maxval=1.0)
    loss2 = jax.block_until_ready(
        nce_criterion_pallas(x2, 5000, target_block_bytes=8192, max_cols=128))
    ref2 = nce_criterion_ref(x2, 5000)
    assert jnp.allclose(loss2, ref2, rtol=1e-3, atol=1e-3), (loss2, ref2)

    print("KERNEL_OK")
</pallas_src>

<mosaic_0001>
module attributes {stable_mosaic.version = 11 : i64} {
  func.func @_nce_tile_kernel(%arg0: i32, %arg1: i32, %arg2: memref<8x16xf32, #tpu.memory_space<vmem>>, %arg3: memref<8x128xf32, #tpu.memory_space<vmem>>) attributes {dimension_semantics = [#tpu.dimension_semantics<parallel>, #tpu.dimension_semantics<parallel>], iteration_bounds = array<i64: 1, 1>, scalar_prefetch = 0 : i64, scratch_operands = 0 : i64, tpu.core_type = #tpu.core_type<tc>, window_params = [{transform_indices = @transform_0, window_bounds = array<i64: 8, 16>}, {transform_indices = @transform_1, window_bounds = array<i64: 8, 128>}]} {
    %c0 = arith.constant 0 : index
    %c0_0 = arith.constant 0 : index
    %0 = vector.load %arg2[%c0, %c0_0] : memref<8x16xf32, #tpu.memory_space<vmem>>, vector<8x16xf32>
    %cst = arith.constant 1.501000e-02 : f32
    %1 = vector.broadcast %cst : f32 to vector<8x16xf32>
    %2 = arith.addf %0, %1 : vector<8x16xf32>
    %3 = math.log %2 : vector<8x16xf32>
    %4 = vector.shape_cast %3 : vector<8x16xf32> to vector<1x8x16xf32>
    %cst_1 = arith.constant dense<0.000000e+00> : vector<1xf32>
    %5 = vector.multi_reduction <add>, %4, %cst_1 [1, 2] : vector<1x8x16xf32> to vector<1xf32>
    %6 = vector.shape_cast %5 : vector<1xf32> to vector<1x1x1xf32>
    %7 = vector.extract %6[0, 0, 0] : f32 from vector<1x1x1xf32>
    %cst_2 = arith.constant 0.000000e+00 : f32
    %8 = arith.subf %cst_2, %7 : f32
    %9 = vector.extract_strided_slice %0 {offsets = [0, 0], sizes = [8, 1], strides = [1, 1]} : vector<8x16xf32> to vector<8x1xf32>
    %10 = math.log %9 : vector<8x1xf32>
    %11 = vector.shape_cast %10 : vector<8x1xf32> to vector<1x8x1xf32>
    %cst_3 = arith.constant dense<0.000000e+00> : vector<1xf32>
    %12 = vector.multi_reduction <add>, %11, %cst_3 [1, 2] : vector<1x8x1xf32> to vector<1xf32>
    %13 = vector.shape_cast %12 : vector<1xf32> to vector<1x1x1xf32>
    %14 = vector.extract %13[0, 0, 0] : f32 from vector<1x1x1xf32>
    %15 = arith.addf %8, %14 : f32
    %16 = vector.broadcast %15 : f32 to vector<8x128xf32>
    %c0_4 = arith.constant 0 : index
    %c0_5 = arith.constant 0 : index
    %17 = vector.load %arg3[%c0_4, %c0_5] : memref<8x128xf32, #tpu.memory_space<vmem>>, vector<8x128xf32>
    tpu.vector_store %arg3[%c0_4, %c0_5], %16 {strides = array<i32>} : memref<8x128xf32, #tpu.memory_space<vmem>>, vector<8x128xf32>,
    return
  }
  func.func @transform_0(%arg0: i32, %arg1: i32) -> (i32, i32) {
    %c0_i32 = arith.constant 0 : i32
    return %arg0, %arg1 : i32, i32
  }
  func.func @transform_1(%arg0: i32, %arg1: i32) -> (i32, i32) {
    %c1_i32 = arith.constant 1 : i32
    %0 = arith.muli %arg0, %c1_i32 : i32
    %1 = arith.addi %0, %arg1 : i32
    %c0_i32 = arith.constant 0 : i32
    %c0_i32_0 = arith.constant 0 : i32
    return %1, %c0_i32 : i32, i32
  }
}

</mosaic_0001>

<bundles_post_ra>
// kernel: tpu_custom_call.1
= control target key start
LH: loop header
LB: loop body
LE: loop exit
PB: predicated region body
PF: predicated region fallthrough
CT: control target
= control target key end

     0   :  { %6 = vsyncpa [#allocation3], 0  ;;  %s156_s0 = inlined_call_operand.hbm [shape: f32[8,16], index: 0, kind: input, shape index: {}]   ;;  %s157_s1 = inlined_call_operand.hbm [shape: f32[8,128], index: 1, kind: output, shape index: {}]  }
   0x1   :  { %7 = vsyncpa [#allocation4], 0  ;;  %s13_s8 = sshll.u32 %s156_s0, 4  ;;  %s138_s9 = smov [#allocation2]   ;;  %s14_s8 = int_to_ptr.hbm [resolvable:$true] %s13_s8 }
   0x2   :  { %s15_s10 = sshll.u32 %s138_s9, 4  ;;  %s16_s10 = int_to_ptr.vmem [resolvable:$true] %s15_s10 }
   0x3   :  { %18 = dma.hbm_to_vmem [thread:$0]  %s14_s8, 128, %s16_s10, [#allocation3]  }
   0x4   :  { %134 = dma.done.wait [#allocation3], 128  }
   0x5   :  { %135 = vsyncadd [#allocation3], 4294967168  ;;  %v24_v0 = vld [vmem:[#allocation2] sm:$0xff]  ;;  %vm28_vm0 = vcmask 130048   ;;  %vm42_vm1 = vcmask 7168   ;;  %s139_s11 = smov [#allocation5]  }
   0x6   :  { %v25_v1 = vadd.f32 0.01501, %v24_v0  ;;  %s64_s12 = sshll.u32 %s139_s11, 4  ;;  %s66_s16 = sshll.u32 %s157_s1, 4  ;;  %s65_s12 = int_to_ptr.vmem [resolvable:$true] %s64_s12  ;;  %s67_s16 = int_to_ptr.hbm [resolvable:$true] %s66_s16 }
   0x8   :  { %82 = vlog2.f32 %v25_v1 }
   0x9   :  { %84 = vlog2.f32 %v24_v0 }
   0xe   :  { %v83_v2 = vpop.eup %82 }
   0xf   :  { %v27_v3 = vmul.f32 0.6931472, %v83_v2  ;;  %v85_v4 = vpop.eup %84 }
  0x10   :  { %v41_v6 = vmul.f32 0.6931472, %v85_v4 }
  0x11   :  { %v29_v5 = vsel %vm28_vm0, %v27_v3, 0.0 }
  0x12   :  { %30 = vadd.xlane.f32.xlu0 %v29_v5  ;;  %v43_v7 = vsel %vm42_vm1, %v41_v6, 0.0 }
  0x1a   :  { %44 = vadd.xlane.f32.xlu0 %v43_v7 }
  0x85   :  { %v31_v8 = vpop.xlane.xlu0 %30 }
  0x86   :  { %v32_v9 = vrot.slane %v31_v8, 4 }
  0x88   :  { %v33_v10 = vadd.f32 %v32_v9, %v31_v8 }
  0x8a   :  { %v34_v11 = vrot.slane %v33_v10, 2 }
  0x8c   :  { %v35_v12 = vadd.f32 %v34_v11, %v33_v10 }
  0x8d   :  { %v45_v13 = vpop.xlane.xlu0 %44 }
  0x8e   :  { %v46_v14 = vrot.slane %v45_v13, 4  ;;  %v36_v15 = vrot.slane %v35_v12, 1 }
  0x90   :  { %v47_v16 = vadd.f32 %v46_v14, %v45_v13  ;;  %v37_v17 = vadd.f32 %v36_v15, %v35_v12 }
  0x92   :  { %v48_v18 = vrot.slane %v47_v16, 2  ;;  %76 = vpush %v37_v17 }
  0x94   :  { %v49_v19 = vadd.f32 %v48_v18, %v47_v16 }
  0x96   :  { %v50_v20 = vrot.slane %v49_v19, 1 }
  0x98   :  { %v51_v21 = vadd.f32 %v50_v20, %v49_v19 }
  0x9a   :  { %78 = vpush %v51_v21 }
  0xc3   :  { %s77_s0 = spop %76 }
  0xc4   :  { %s39_s13 = ssub.f32 0.0, %s77_s0 }
  0xcb   :  { %s79_s17 = spop %78 }
  0xcc   :  { %s53_s18 = sadd.f32 %s79_s17, %s39_s13 }
  0xce   :  { %v54_v22 = vstv %s53_s18 }
  0xcf   :  { %55 = vst [vmem:[#allocation5] sm:$0xff] %v54_v22 }
  0xd0   :  { %69 = dma.vmem_to_hbm [thread:$0]  %s65_s12, 128, %s67_s16, [#allocation4]  }
  0xd1   :  { %136 = dma.done.wait [#allocation4], 128  }
  0xd2   :  { %137 = vsyncadd [#allocation4], 4294967168 }
  0xd3   :  { %74 = vsyncpa [#allocation3], 1 }
  0xd4   :  { %75 = vsyncpa [#allocation4], 1 }

</bundles_post_ra>
